<compile_context>
chip_gen: v5e
topology: v5e:2x2
jax: 0.10.0
libtpu: 0.0.40
codegen_flags: <defaults>
</compile_context>

<pallas_src>
import jax
import jax.numpy as jnp
from jax.experimental import pallas as pl
from jax.experimental.pallas import tpu as pltpu

LANE = 128  # TPU lane width


def mlp_kernel(x_ref, p_ref, o_ref):
    # x_ref : [2, Bt]   input features on sublanes, batch on lanes
    # p_ref : [8, 128]  packed params: lanes 0-1 = fc1 weight (as [8,2]),
    #                   lane 2 = fc2 weight, slab[0,3] = fc2 bias
    # o_ref : [1, Bt]   lane-dense output (batch on lanes)
    w1c0 = p_ref[:, 0:1]            # [8, 1] fc1 weights for input feature 0
    w1c1 = p_ref[:, 1:2]            # [8, 1] fc1 weights for input feature 1
    w2c = p_ref[:, 2:3]             # [8, 1] fc2 weights
    b2 = p_ref[0:1, 3:4]            # [1, 1] fc2 bias

    x0 = x_ref[0:1, :]              # [1, Bt]
    x1 = x_ref[1:2, :]              # [1, Bt]

    # fc1 (no bias) as two broadcast multiply-adds on the VPU, then ReLU.
    h = jnp.maximum(w1c0 * x0 + w1c1 * x1, 0.0)      # [8, Bt]

    # fc2 as elementwise multiply + sublane reduce (XLU), plus broadcast bias.
    y = jnp.sum(w2c * h, axis=0, keepdims=True)      # [1, Bt]
    o_ref[...] = (y + b2).astype(o_ref.dtype)


def _default_block_b():
    # Double-buffered VMEM footprint ~= 128 * block_b bytes: the (2, Bt) input
    # and (1, Bt) output tiles are each sublane-padded to 8 rows (32*Bt bytes
    # per buffer, two buffers each).
    #   256K lanes -> ~32 MiB footprint: fits v5e/v6e (128 MiB) and v7x (64 MiB/TC).
    #   384K lanes -> ~48 MiB footprint: only where there is VMEM headroom (v6e).
    try:
        kind = jax.devices()[0].device_kind.lower()
    except Exception:
        kind = ""
    if "v6" in kind:
        return 384 * 1024
    return 256 * 1024


def _pack_params(w1, w2, b2):
    # One (8, 128) f32 slab holding every parameter -> a single param DMA.
    slab = jnp.zeros((8, LANE), jnp.float32)
    slab = slab.at[:, 0:2].set(w1.astype(jnp.float32).T)            # fc1 W as [8, 2]
    slab = slab.at[:, 2:3].set(w2.astype(jnp.float32).reshape(8, 1))  # fc2 W
    slab = slab.at[0:1, 3:4].set(jnp.asarray(b2, jnp.float32).reshape(1, 1))
    return slab


def simple_net_forward_fm(x_fm, w1, w2, b2, *, block_b=None):
    """Feature-major forward: x_fm is [2, B] f32-like; returns [1, B] f32.

    Use this entry point when the producer can supply a feature-major layout;
    it avoids both wrapper transposes entirely.
    w1: [2, 8] (transposed vs. PyTorch's [8, 2]); w2: [8, 1]; b2: scalar-like.
    """
    assert x_fm.shape[0] == 2
    B = x_fm.shape[1]

    if block_b is None:
        block_b = _default_block_b()
    block_b = max(LANE, (block_b // LANE) * LANE)    # lane-aligned batch tile
    if B <= block_b:
        block_b = B                                  # single full-extent block
    grid = (pl.cdiv(B, block_b),)

    # Raise the scoped VMEM limit to cover the double-buffered footprint
    # (~128 * block_b bytes) with headroom; never below the 32 MiB default.
    footprint = 128 * block_b
    vmem_limit = int(min(100 << 20, max(32 << 20, footprint + (4 << 20))))

    slab = _pack_params(w1, w2, b2)

    out = pl.pallas_call(
        mlp_kernel,
        out_shape=jax.ShapeDtypeStruct((1, B), jnp.float32),
        grid=grid,
        in_specs=[
            pl.BlockSpec((2, block_b), lambda i: (0, i)),   # x tile (ragged tail masked)
            pl.BlockSpec((8, LANE), lambda i: (0, 0)),      # params, VMEM-resident
        ],
        out_specs=pl.BlockSpec((1, block_b), lambda i: (0, i)),
        compiler_params=pltpu.CompilerParams(
            dimension_semantics=("parallel",),
            vmem_limit_bytes=vmem_limit,
        ),
        cost_estimate=pl.CostEstimate(
            flops=int(57 * B),            # 2x8 MAC + relu + 8x1 MAC + bias per element
            transcendentals=0,
            bytes_accessed=int(12 * B) + 8 * LANE * 4,
        ),
    )(x_fm.astype(jnp.float32), slab)
    return out


def simple_net_forward(x, w1, w2, b2, *, block_b=None):
    """PyTorch-layout forward: relu(x @ w1) @ w2 + b2.

    x: [B, 2] f32; w1: [2, 8] (transposed vs. PyTorch's [8, 2]); w2: [8, 1];
    b2: scalar-like.  Returns [B, 1] f32.

    NOTE: the two transposes here are pure layout plumbing for the public
    [B, 2] -> [B, 1] interface; callers that control their layout should use
    simple_net_forward_fm directly and skip them.
    """
    out_fm = simple_net_forward_fm(x.astype(jnp.float32).T, w1, w2, b2,
                                   block_b=block_b)
    return out_fm.T


if __name__ == "__main__":
    key = jax.random.PRNGKey(0)
    kx, k1, k2, kb = jax.random.split(key, 4)

    B = 8
    x = jax.random.normal(kx, (B, 2), dtype=jnp.float32)

    # Deterministic PyTorch-style init: U(-1/sqrt(fan_in), 1/sqrt(fan_in))
    w1 = jax.random.uniform(k1, (2, 8), dtype=jnp.float32,
                            minval=-1.0 / jnp.sqrt(2.0), maxval=1.0 / jnp.sqrt(2.0))
    w2 = jax.random.uniform(k2, (8, 1), dtype=jnp.float32,
                            minval=-1.0 / jnp.sqrt(8.0), maxval=1.0 / jnp.sqrt(8.0))
    b2 = jax.random.uniform(kb, (1, 1), dtype=jnp.float32,
                            minval=-1.0 / jnp.sqrt(8.0), maxval=1.0 / jnp.sqrt(8.0))

    out = simple_net_forward(x, w1, w2, b2)
    jax.block_until_ready(out)

    # Pure-JAX reference for correctness.
    ref = jnp.maximum(x @ w1, 0.0) @ w2 + b2
    assert out.shape == (B, 1), out.shape
    assert jnp.allclose(out, ref, atol=1e-5), (out, ref)

    # Exercise the multi-block, ragged-last-block path (no wrapper padding).
    B2 = 300
    x2 = jax.random.normal(kx, (B2, 2), dtype=jnp.float32)
    out2 = simple_net_forward(x2, w1, w2, b2, block_b=128)
    jax.block_until_ready(out2)
    ref2 = jnp.maximum(x2 @ w1, 0.0) @ w2 + b2
    assert out2.shape == (B2, 1), out2.shape
    assert jnp.allclose(out2, ref2, atol=1e-5)

    # NOTE: at these tiny batch sizes the kernel is launch/DMA-latency bound;
    # the default 256K-384K lane tiles + raised vmem_limit_bytes are what put
    # it near HBM roofline at production batch sizes.
    print("KERNEL_OK")
</pallas_src>

<mosaic_0001>
module attributes {stable_mosaic.version = 11 : i64} {
  func.func @mlp_kernel(%arg0: i32, %arg1: memref<2x8xf32, #tpu.memory_space<vmem>>, %arg2: memref<8x128xf32, #tpu.memory_space<vmem>>, %arg3: memref<1x8xf32, #tpu.memory_space<vmem>>) attributes {dimension_semantics = [#tpu.dimension_semantics<parallel>], iteration_bounds = array<i64: 1>, scalar_prefetch = 0 : i64, scratch_operands = 0 : i64, tpu.core_type = #tpu.core_type<tc>, window_params = [{transform_indices = @transform_0, window_bounds = array<i64: 2, 8>}, {pipeline_mode = #tpu.pipeline_mode<synchronous>, transform_indices = @transform_1, window_bounds = array<i64: 8, 128>}, {transform_indices = @transform_2, window_bounds = array<i64: 1, 8>}]} {
    %c0 = arith.constant 0 : index
    %c0_0 = arith.constant 0 : index
    %0 = vector.load %arg2[%c0, %c0_0] : memref<8x128xf32, #tpu.memory_space<vmem>>, vector<8x1xf32>
    %c0_1 = arith.constant 0 : index
    %c1 = arith.constant 1 : index
    %1 = vector.load %arg2[%c0_1, %c1] : memref<8x128xf32, #tpu.memory_space<vmem>>, vector<8x1xf32>
    %c0_2 = arith.constant 0 : index
    %c2 = arith.constant 2 : index
    %2 = vector.load %arg2[%c0_2, %c2] : memref<8x128xf32, #tpu.memory_space<vmem>>, vector<8x1xf32>
    %c0_3 = arith.constant 0 : index
    %c3 = arith.constant 3 : index
    %3 = vector.load %arg2[%c0_3, %c3] : memref<8x128xf32, #tpu.memory_space<vmem>>, vector<1x1xf32>
    %c0_4 = arith.constant 0 : index
    %c0_5 = arith.constant 0 : index
    %4 = vector.load %arg1[%c0_4, %c0_5] : memref<2x8xf32, #tpu.memory_space<vmem>>, vector<1x8xf32>
    %c1_6 = arith.constant 1 : index
    %c0_7 = arith.constant 0 : index
    %5 = vector.load %arg1[%c1_6, %c0_7] : memref<2x8xf32, #tpu.memory_space<vmem>>, vector<1x8xf32>
    %6 = vector.broadcast %0 : vector<8x1xf32> to vector<8x8xf32>
    %7 = vector.broadcast %4 : vector<1x8xf32> to vector<8x8xf32>
    %8 = arith.mulf %6, %7 : vector<8x8xf32>
    %9 = vector.broadcast %1 : vector<8x1xf32> to vector<8x8xf32>
    %10 = vector.broadcast %5 : vector<1x8xf32> to vector<8x8xf32>
    %11 = arith.mulf %9, %10 : vector<8x8xf32>
    %12 = arith.addf %8, %11 : vector<8x8xf32>
    %cst = arith.constant 0.000000e+00 : f32
    %13 = vector.broadcast %cst : f32 to vector<8x8xf32>
    %14 = arith.maximumf %12, %13 : vector<8x8xf32>
    %15 = vector.broadcast %2 : vector<8x1xf32> to vector<8x8xf32>
    %16 = arith.mulf %15, %14 : vector<8x8xf32>
    %cst_8 = arith.constant dense<0.000000e+00> : vector<8xf32>
    %17 = vector.multi_reduction <add>, %16, %cst_8 [0] : vector<8x8xf32> to vector<8xf32>
    %18 = vector.shape_cast %17 : vector<8xf32> to vector<1x8xf32>
    %19 = vector.broadcast %3 : vector<1x1xf32> to vector<1x8xf32>
    %20 = arith.addf %18, %19 : vector<1x8xf32>
    %c0_9 = arith.constant 0 : index
    %c0_10 = arith.constant 0 : index
    %21 = vector.load %arg3[%c0_9, %c0_10] : memref<1x8xf32, #tpu.memory_space<vmem>>, vector<1x8xf32>
    tpu.vector_store %arg3[%c0_9, %c0_10], %20 {strides = array<i32>} : memref<1x8xf32, #tpu.memory_space<vmem>>, vector<1x8xf32>,
    return
  }
  func.func @transform_0(%arg0: i32) -> (i32, i32) {
    %c0_i32 = arith.constant 0 : i32
    %c0_i32_0 = arith.constant 0 : i32
    return %c0_i32, %arg0 : i32, i32
  }
  func.func @transform_1(%arg0: i32) -> (i32, i32) {
    %c0_i32 = arith.constant 0 : i32
    %c0_i32_0 = arith.constant 0 : i32
    %c0_i32_1 = arith.constant 0 : i32
    return %c0_i32, %c0_i32_0 : i32, i32
  }
  func.func @transform_2(%arg0: i32) -> (i32, i32) {
    %c0_i32 = arith.constant 0 : i32
    %c0_i32_0 = arith.constant 0 : i32
    return %c0_i32, %arg0 : i32, i32
  }
}

</mosaic_0001>

<bundles_post_ra>
// kernel: tpu_custom_call.1
= control target key start
LH: loop header
LB: loop body
LE: loop exit
PB: predicated region body
PF: predicated region fallthrough
CT: control target
= control target key end

     0   :  { %7 = vsyncpa [#allocation3], 0  ;;  %s221_s0 = inlined_call_operand.hbm [shape: f32[2,8], index: 0, kind: input, shape index: {}]   ;;  %s222_s1 = inlined_call_operand.hbm [shape: f32[8,128], index: 1, kind: input, shape index: {}]   ;;  %s223_s2 = inlined_call_operand.hbm [shape: f32[1,8], index: 2, kind: output, shape index: {}]  }
   0x1   :  { %8 = vsyncpa [#allocation6], 0 }
   0x2   :  { %9 = vsyncpa [#allocation4], 0  ;;  %s15_s11 = sshll.u32 %s221_s0, 4  ;;  %s190_s12 = smov [#allocation2]   ;;  %s16_s11 = int_to_ptr.hbm [resolvable:$true] %s15_s11 }
   0x3   :  { %s17_s13 = sshll.u32 %s190_s12, 4  ;;  %s26_s16 = sshll.u32 %s222_s1, 4  ;;  %s18_s13 = int_to_ptr.vmem [resolvable:$true] %s17_s13  ;;  %s27_s16 = int_to_ptr.hbm [resolvable:$true] %s26_s16 }
   0x4   :  { %20 = dma.hbm_to_vmem [thread:$0]  %s16_s11, 32, %s18_s13, [#allocation3]  }
   0x5   :  { %s191_s17 = smov [#allocation5]  }
   0x6   :  { %s28_s18 = sshll.u32 %s191_s17, 4  ;;  %s29_s18 = int_to_ptr.vmem [resolvable:$true] %s28_s18 }
   0x7   :  { %31 = dma.hbm_to_vmem [thread:$0]  %s27_s16, 128, %s29_s18, [#allocation6]  }
   0x8   :  { %184 = dma.done.wait [#allocation3], 32  }
   0x9   :  { %185 = vsyncadd [#allocation3], 4294967264 }
   0xa   :  { %186 = dma.done.wait [#allocation6], 128  }
   0xb   :  { %187 = vsyncadd [#allocation6], 4294967168  ;;  %v192_v0 = vmov 0   ;;  %v193_v1 = vmov 2   ;;  %v40_v2 = vld [vmem:[#allocation5] sm:$0xff]  ;;  %v194_v4 = vmov 1  }
   0xc   :  { %105 = vset.pattern.permute.xlu0 %v192_v0  ;;  %107 = vset.pattern.permute.xlu1 %v193_v1  ;;  %v41_v3 = vld [vmem:[#allocation5] sm:$0x1]  ;;  %v195_v5 = vmov 3   ;;  %v110_v7 = vld [vmem:[#allocation2] ss:$0 sm:$0xff]  ;;  %vm64_vm0 = vcmask 64512  }
   0xd   :  { %46 = vperm.xlu0 %105, %v40_v2   ;;  %60 = vperm.xlu1 %107, %v40_v2   ;;  %v111_v8 = vld [vmem:[#allocation2 + $0x1] ss:$0 sm:$0xff]  ;;  %s196_s0 = smov [#allocation7]   ;;  %s87_s21 = sshll.u32 %s223_s2, 4  ;;  %vm78_vm1 = vcmask 57344   ;;  %s88_s21 = int_to_ptr.hbm [resolvable:$true] %s87_s21 }
   0xe   :  { %s85_s1 = sshll.u32 %s196_s0, 4  ;;  %s86_s1 = int_to_ptr.vmem [resolvable:$true] %s85_s1 }
  0x15   :  { %106 = vset.pattern.permute.xlu0 %v194_v4  ;;  %108 = vset.pattern.permute.xlu1 %v195_v5 }
  0x16   :  { %52 = vperm.xlu0 %106, %v40_v2   ;;  %74 = vperm.xlu1 %108, %v41_v3  }
  0x1e   :  { %109 = vset.pattern.permute.xlu0 %v195_v5 }
  0x7f   :  { %v47_v6 = vpop.permute.xlu0 %46  ;;  %v61_v13 = vpop.permute.xlu1 %60 }
  0x80   :  { %v50_v10 = vmul.f32 %v110_v7, %v47_v6 }
  0x88   :  { %v53_v9 = vpop.permute.xlu0 %52  ;;  %v75_v22 = vpop.permute.xlu1 %74 }
  0x89   :  { %v56_v11 = vmul.f32 %v111_v8, %v53_v9 }
  0x8b   :  { %v57_v12 = vadd.f32 %v56_v11, %v50_v10 }
  0x8d   :  { %v58_v14 = vmax.f32 %v57_v12, 0.0 }
  0x8f   :  { %v63_v15 = vmul.f32 %v61_v13, %v58_v14 }
  0x91   :  { %v65_v16 = vsel %vm64_vm0, %v63_v15, 0.0 }
  0x92   :  { %v66_v17 = vrot.slane %v65_v16, 4 }
  0x94   :  { %v67_v18 = vadd.f32 %v66_v17, %v65_v16 }
  0x96   :  { %v68_v19 = vrot.slane %v67_v18, 2 }
  0x98   :  { %v69_v20 = vadd.f32 %v68_v19, %v67_v18 }
  0x9a   :  { %v70_v21 = vrot.slane %v69_v20, 1 }
  0x9c   :  { %v71_v23 = vadd.f32 %v70_v21, %v69_v20 }
  0x9e   :  { %v77_v24 = vadd.f32 %v75_v22, %v71_v23 }
  0xa0   :  { %79 = vst.msk [vmem:[#allocation7] sm:$0x1] %vm78_vm1, %v77_v24 }
  0xa1   :  { %90 = dma.vmem_to_hbm [thread:$0]  %s86_s1, 16, %s88_s21, [#allocation4]  }
  0xa2   :  { %188 = dma.done.wait [#allocation4], 16  }
  0xa3   :  { %189 = vsyncadd [#allocation4], 4294967280 }
  0xa4   :  { %95 = vsyncpa [#allocation3], 1 }
  0xa5   :  { %96 = vsyncpa [#allocation6], 1 }
  0xa6   :  { %97 = vsyncpa [#allocation4], 1 }

</bundles_post_ra>
